<compile_context>
chip_gen: v7x
topology: tpu7x:2x2x1
jax: 0.10.0
libtpu: 0.0.40
codegen_flags: <defaults>
</compile_context>

<pallas_src>
import functools

import jax
import jax.numpy as jnp
from jax.experimental import pallas as pl
from jax.experimental.pallas import tpu as pltpu


def attention_rel_scl_kernel(x_ref, wqkv_ref, bias_ref, gamma_ref, beta_ref,
                             o_ref, acc_ref, *, num_heads, scale, eps):
    Bt, S, E = x_ref.shape
    D = E // num_heads

    # ---- Fused Q/K/V projection: one MXU pass, M = Bt*S rows, N = 3E cols. ----
    x2 = x_ref[...].reshape(Bt * S, E)                       # leading-dim merge (free), bf16
    qkv = jnp.dot(x2, wqkv_ref[...],
                  preferred_element_type=jnp.float32)        # (Bt*S, 3E) fp32 accumulation

    # Apply the softmax scale once to q (cheaper than scaling every (S,S) score matrix),
    # then cast q/k/v to bf16 for the attention matmuls (mirrors the module's .half()).
    q = (qkv[:, 0 * E:1 * E] * scale).astype(jnp.bfloat16).reshape(Bt, S, E)
    k = qkv[:, 1 * E:2 * E].astype(jnp.bfloat16).reshape(Bt, S, E)
    v = qkv[:, 2 * E:3 * E].astype(jnp.bfloat16).reshape(Bt, S, E)

    # ---- Attention, batched over the batch block; static loop over the few heads. ----
    for h in range(num_heads):
        sl = slice(h * D, (h + 1) * D)
        qh = q[:, :, sl]                                     # (Bt, S, D)
        kh = k[:, :, sl]
        vh = v[:, :, sl]

        # scores = (q*scale) @ k^T, expressed as a batched dot_general (no explicit .T).
        s = jnp.einsum('bqd,bkd->bqk', qh, kh,
                       preferred_element_type=jnp.float32)   # (Bt, S, S) fp32

        # softmax in fp32; reciprocal goes to the EUP slot.
        s = s - jnp.max(s, axis=-1, keepdims=True)
        p = jnp.exp(s)
        p = p * pl.reciprocal(jnp.sum(p, axis=-1, keepdims=True), approx=True)

        # Relative bias is added AFTER softmax (module semantics).
        p = p + bias_ref[h]                                  # (S, S) broadcasts over batch

        oh = jnp.einsum('bqk,bkd->bqd', p.astype(jnp.bfloat16), vh,
                        preferred_element_type=jnp.float32)  # (Bt, S, D) fp32

        # Write the head slice directly into scratch (no lane-axis concat).
        acc_ref[:, :, sl] = oh

    # ---- LayerNorm over the feature axis (torch default eps). ----
    out = acc_ref[...]                                       # (Bt, S, E) fp32
    mu = jnp.mean(out, axis=-1, keepdims=True)
    var = jnp.mean(jnp.square(out - mu), axis=-1, keepdims=True)
    y = (out - mu) * jax.lax.rsqrt(var + eps)
    y = y * gamma_ref[0] + beta_ref[0]

    # Lane-dense store: last dim S*E is a multiple of 128 -> unmasked full-lane stores.
    o_ref[...] = y.reshape(Bt, S * E)


def attention_rel_scl(x, wq, wk, wv, bias_hss, gamma, beta, *, num_heads,
                      eps=1e-5, batch_block=None):
    B, S, E = x.shape
    H = num_heads
    scale = float(E) ** (-0.5)

    if batch_block is None:
        # Target >= ~256 MXU rows per projection matmul; whole batch per step if small.
        # TODO(synk): on v7x (2 TensorCores/chip) prefer batch_block = B // 2 so the
        # 'parallel' grid axis has >= 2 steps to shard across cores.
        batch_block = min(B, max(1, 256 // S))
        while B % batch_block:
            batch_block -= 1
    assert B % batch_block == 0
    num_blocks = B // batch_block

    # bf16 matmul operands: halves HBM traffic and resident VMEM (matters on v7x's 64 MiB),
    # and runs the MXU at its bf16 rate on v6e/v7x.  fp32 accumulation in-kernel.
    x_bf = x.astype(jnp.bfloat16)
    wqkv = jnp.concatenate([wq, wk, wv], axis=1).astype(jnp.bfloat16)   # (E, 3E)
    bias_f32 = bias_hss.astype(jnp.float32)                             # (H, S, S)
    gamma2 = gamma.reshape(1, E).astype(jnp.float32)
    beta2 = beta.reshape(1, E).astype(jnp.float32)
    # TODO(synk): for large S (v7x VMEM), build bias tiles in-kernel from the (2S-1, H)
    # table instead of materializing the dense (H, S, S) array.

    kernel = functools.partial(attention_rel_scl_kernel,
                               num_heads=H, scale=scale, eps=eps)

    flops = 2 * B * S * E * (3 * E) + 4 * B * S * S * E     # projections + scores + PV
    bytes_accessed = (B * S * E * 2 + E * 3 * E * 2 + H * S * S * 4
                      + 2 * E * 4 + B * S * E * 4)
    cost = pl.CostEstimate(flops=flops,
                           transcendentals=B * H * S * S,
                           bytes_accessed=bytes_accessed)

    out_flat = pl.pallas_call(
        kernel,
        out_shape=jax.ShapeDtypeStruct((B, S * E), jnp.float32),
        grid_spec=pltpu.PrefetchScalarGridSpec(
            num_scalar_prefetch=0,
            grid=(num_blocks,),
            in_specs=[
                pl.BlockSpec((batch_block, S, E), lambda b: (b, 0, 0)),   # x (bf16)
                pl.BlockSpec((E, 3 * E), lambda b: (0, 0)),               # fused Wqkv (bf16)
                pl.BlockSpec((H, S, S), lambda b: (0, 0, 0)),             # relative bias
                pl.BlockSpec((1, E), lambda b: (0, 0)),                   # LN gamma
                pl.BlockSpec((1, E), lambda b: (0, 0)),                   # LN beta
            ],
            out_specs=pl.BlockSpec((batch_block, S * E), lambda b: (b, 0)),
            scratch_shapes=[pltpu.VMEM((batch_block, S, E), jnp.float32)],
        ),
        compiler_params=pltpu.CompilerParams(dimension_semantics=("parallel",)),
        cost_estimate=cost,
    )(x_bf, wqkv, bias_f32, gamma2, beta2)

    # Metadata-only reshape back to (B, S, E).
    return out_flat.reshape(B, S, E)


def build_relative_bias(table, seq_len):
    # Pure index glue mirroring the torch buffer:
    # relative_index[i*S + j] = i - j + S - 1 ; gather -> rearrange '(h w) c -> 1 c h w'
    rel_idx = jnp.arange(seq_len)[:, None] - jnp.arange(seq_len)[None, :] + seq_len - 1  # (S, S)
    bias = table[rel_idx]                     # (S, S, H)
    return jnp.transpose(bias, (2, 0, 1))     # (H, S, S)


def reference(x, wq, wk, wv, bias_hss, gamma, beta, num_heads, eps=1e-5):
    B, S, E = x.shape
    D = E // num_heads
    scale = float(E) ** (-0.5)
    q = (x @ wq).reshape(B, S, num_heads, D).transpose(0, 2, 1, 3)
    k = (x @ wk).reshape(B, S, num_heads, D).transpose(0, 2, 1, 3)
    v = (x @ wv).reshape(B, S, num_heads, D).transpose(0, 2, 1, 3)
    attn = jnp.einsum('bhqd,bhkd->bhqk', q, k) * scale
    attn = jax.nn.softmax(attn, axis=-1)
    attn = attn + bias_hss[None]
    out = jnp.einsum('bhqk,bhkd->bhqd', attn, v)
    out = out.transpose(0, 2, 1, 3).reshape(B, S, E)
    mu = out.mean(-1, keepdims=True)
    var = ((out - mu) ** 2).mean(-1, keepdims=True)
    return (out - mu) / jnp.sqrt(var + eps) * gamma + beta


if __name__ == "__main__":
    # Small shapes consistent with the module: batch=2, seq_len=8, emb_size=32, heads=4.
    B, S, E, H = 2, 8, 32, 4
    key = jax.random.PRNGKey(0)
    kx, kq, kk, kv, kt, kg, kb = jax.random.split(key, 7)

    x = jax.random.normal(kx, (B, S, E), dtype=jnp.float32)
    # nn.Linear(emb, emb, bias=False) weights, stored as (in, out) so y = x @ W.
    wq = jax.random.normal(kq, (E, E), dtype=jnp.float32) * 0.1
    wk = jax.random.normal(kk, (E, E), dtype=jnp.float32) * 0.1
    wv = jax.random.normal(kv, (E, E), dtype=jnp.float32) * 0.1
    # relative_bias_table is nn.Parameter(zeros(2S-1, H)); initialized randomly here so
    # the bias path is actually exercised (deterministic via fixed key).
    rel_table = jax.random.normal(kt, (2 * S - 1, H), dtype=jnp.float32) * 0.05
    # LayerNorm affine params (torch defaults are ones/zeros; perturbed deterministically).
    gamma = 1.0 + 0.1 * jax.random.normal(kg, (E,), dtype=jnp.float32)
    beta = 0.1 * jax.random.normal(kb, (E,), dtype=jnp.float32)

    bias_hss = build_relative_bias(rel_table, S)   # (H, S, S)

    out = attention_rel_scl(x, wq, wk, wv, bias_hss, gamma, beta, num_heads=H)
    out = jax.block_until_ready(out)

    ref = reference(x, wq, wk, wv, bias_hss, gamma, beta, num_heads=H)
    assert out.shape == (B, S, E) and out.dtype == jnp.float32
    # Tolerance accounts for bf16 matmul inputs (the torch module itself runs fp16).
    assert jnp.allclose(out, ref, rtol=5e-2, atol=5e-2), "mismatch vs reference"

    print("KERNEL_OK")
</pallas_src>

<mosaic_0001>
module attributes {stable_mosaic.version = 11 : i64} {
  func.func @attention_rel_scl_kernel(%arg0: i32, %arg1: memref<2x8x32xbf16, #tpu.memory_space<vmem>>, %arg2: memref<32x96xbf16, #tpu.memory_space<vmem>>, %arg3: memref<4x8x8xf32, #tpu.memory_space<vmem>>, %arg4: memref<1x32xf32, #tpu.memory_space<vmem>>, %arg5: memref<1x32xf32, #tpu.memory_space<vmem>>, %arg6: memref<2x256xf32, #tpu.memory_space<vmem>>, %arg7: memref<2x8x32xf32, #tpu.memory_space<vmem>>) attributes {dimension_semantics = [#tpu.dimension_semantics<parallel>], iteration_bounds = array<i64: 1>, scalar_prefetch = 0 : i64, scratch_operands = 1 : i64, tpu.core_type = #tpu.core_type<tc>, window_params = [{transform_indices = @transform_0, window_bounds = array<i64: 2, 8, 32>}, {pipeline_mode = #tpu.pipeline_mode<synchronous>, transform_indices = @transform_1, window_bounds = array<i64: 32, 96>}, {pipeline_mode = #tpu.pipeline_mode<synchronous>, transform_indices = @transform_2, window_bounds = array<i64: 4, 8, 8>}, {pipeline_mode = #tpu.pipeline_mode<synchronous>, transform_indices = @transform_3, window_bounds = array<i64: 1, 32>}, {pipeline_mode = #tpu.pipeline_mode<synchronous>, transform_indices = @transform_4, window_bounds = array<i64: 1, 32>}, {transform_indices = @transform_5, window_bounds = array<i64: 2, 256>}]} {
    %c0 = arith.constant 0 : index
    %c0_0 = arith.constant 0 : index
    %c0_1 = arith.constant 0 : index
    %0 = vector.load %arg1[%c0, %c0_0, %c0_1] : memref<2x8x32xbf16, #tpu.memory_space<vmem>>, vector<2x8x32xbf16>
    %1 = vector.shape_cast %0 : vector<2x8x32xbf16> to vector<16x32xbf16>
    %c0_2 = arith.constant 0 : index
    %c0_3 = arith.constant 0 : index
    %2 = vector.load %arg2[%c0_2, %c0_3] : memref<32x96xbf16, #tpu.memory_space<vmem>>, vector<32x96xbf16>
    %cst = arith.constant dense<0.000000e+00> : vector<16x96xf32>
    %3 = tpu.matmul %1, %2, %cst {dimension_numbers = #tpu.dot_dimension_numbers<[1], [0], [0], [1], [0, 0, 1, 1], [], []>} : vector<16x32xbf16>, vector<32x96xbf16>, vector<16x96xf32> -> vector<16x96xf32>
    %4 = vector.extract_strided_slice %3 {offsets = [0, 0], sizes = [16, 32], strides = [1, 1]} : vector<16x96xf32> to vector<16x32xf32>
    %cst_4 = arith.constant 0.176776692 : f32
    %5 = vector.broadcast %cst_4 : f32 to vector<16x32xf32>
    %6 = arith.mulf %4, %5 : vector<16x32xf32>
    %7 = arith.truncf %6 : vector<16x32xf32> to vector<16x32xbf16>
    %8 = vector.shape_cast %7 : vector<16x32xbf16> to vector<2x8x32xbf16>
    %9 = vector.extract_strided_slice %3 {offsets = [0, 32], sizes = [16, 32], strides = [1, 1]} : vector<16x96xf32> to vector<16x32xf32>
    %10 = arith.truncf %9 : vector<16x32xf32> to vector<16x32xbf16>
    %11 = vector.shape_cast %10 : vector<16x32xbf16> to vector<2x8x32xbf16>
    %12 = vector.extract_strided_slice %3 {offsets = [0, 64], sizes = [16, 32], strides = [1, 1]} : vector<16x96xf32> to vector<16x32xf32>
    %13 = arith.truncf %12 : vector<16x32xf32> to vector<16x32xbf16>
    %14 = vector.shape_cast %13 : vector<16x32xbf16> to vector<2x8x32xbf16>
    %15 = vector.extract_strided_slice %8 {offsets = [0, 0, 0], sizes = [2, 8, 8], strides = [1, 1, 1]} : vector<2x8x32xbf16> to vector<2x8x8xbf16>
    %16 = vector.extract_strided_slice %11 {offsets = [0, 0, 0], sizes = [2, 8, 8], strides = [1, 1, 1]} : vector<2x8x32xbf16> to vector<2x8x8xbf16>
    %17 = vector.extract_strided_slice %14 {offsets = [0, 0, 0], sizes = [2, 8, 8], strides = [1, 1, 1]} : vector<2x8x32xbf16> to vector<2x8x8xbf16>
    "tpu.trace_start"() <{level = 10 : i32, message = "bqd,bkd->bqk"}> : () -> ()
    %cst_5 = arith.constant dense<0.000000e+00> : vector<2x8x8xf32>
    %18 = tpu.matmul %15, %16, %cst_5 {dimension_numbers = #tpu.dot_dimension_numbers<[2], [2], [1], [1], [0, 0, 0, 1, 1, 1], [0], [0]>} : vector<2x8x8xbf16>, vector<2x8x8xbf16>, vector<2x8x8xf32> -> vector<2x8x8xf32>
    "tpu.trace_stop"() : () -> ()
    %cst_6 = arith.constant dense<0xFF800000> : vector<2x8xf32>
    %19 = vector.multi_reduction <maximumf>, %18, %cst_6 [2] : vector<2x8x8xf32> to vector<2x8xf32>
    %20 = vector.shape_cast %19 : vector<2x8xf32> to vector<2x8x1xf32>
    %21 = vector.broadcast %20 : vector<2x8x1xf32> to vector<2x8x8xf32>
    %22 = arith.subf %18, %21 : vector<2x8x8xf32>
    %23 = math.exp %22 : vector<2x8x8xf32>
    %cst_7 = arith.constant dense<0.000000e+00> : vector<2x8xf32>
    %24 = vector.multi_reduction <add>, %23, %cst_7 [2] : vector<2x8x8xf32> to vector<2x8xf32>
    %25 = vector.shape_cast %24 : vector<2x8xf32> to vector<2x8x1xf32>
    %26 = tpu.reciprocal %25 {approx = true} : vector<2x8x1xf32> -> vector<2x8x1xf32>
    %27 = vector.broadcast %26 : vector<2x8x1xf32> to vector<2x8x8xf32>
    %28 = arith.mulf %23, %27 : vector<2x8x8xf32>
    %c0_8 = arith.constant 0 : index
    %c0_9 = arith.constant 0 : index
    %c0_10 = arith.constant 0 : index
    %29 = vector.load %arg3[%c0_8, %c0_9, %c0_10] : memref<4x8x8xf32, #tpu.memory_space<vmem>>, vector<1x8x8xf32>
    %30 = vector.shape_cast %29 : vector<1x8x8xf32> to vector<8x8xf32>
    %31 = vector.shape_cast %30 : vector<8x8xf32> to vector<1x8x8xf32>
    %32 = vector.broadcast %31 : vector<1x8x8xf32> to vector<2x8x8xf32>
    %33 = arith.addf %28, %32 : vector<2x8x8xf32>
    %34 = arith.truncf %33 : vector<2x8x8xf32> to vector<2x8x8xbf16>
    "tpu.trace_start"() <{level = 10 : i32, message = "bqk,bkd->bqd"}> : () -> ()
    %cst_11 = arith.constant dense<0.000000e+00> : vector<2x8x8xf32>
    %35 = tpu.matmul %34, %17, %cst_11 {dimension_numbers = #tpu.dot_dimension_numbers<[2], [1], [1], [2], [0, 0, 0, 1, 1, 2], [0], [0]>} : vector<2x8x8xbf16>, vector<2x8x8xbf16>, vector<2x8x8xf32> -> vector<2x8x8xf32>
    "tpu.trace_stop"() : () -> ()
    %c0_12 = arith.constant 0 : index
    %c0_13 = arith.constant 0 : index
    %c0_14 = arith.constant 0 : index
    %36 = vector.load %arg7[%c0_12, %c0_13, %c0_14] : memref<2x8x32xf32, #tpu.memory_space<vmem>>, vector<2x8x8xf32>
    tpu.vector_store %arg7[%c0_12, %c0_13, %c0_14], %35 {strides = array<i32>} : memref<2x8x32xf32, #tpu.memory_space<vmem>>, vector<2x8x8xf32>,
    %37 = vector.extract_strided_slice %8 {offsets = [0, 0, 8], sizes = [2, 8, 8], strides = [1, 1, 1]} : vector<2x8x32xbf16> to vector<2x8x8xbf16>
    %38 = vector.extract_strided_slice %11 {offsets = [0, 0, 8], sizes = [2, 8, 8], strides = [1, 1, 1]} : vector<2x8x32xbf16> to vector<2x8x8xbf16>
    %39 = vector.extract_strided_slice %14 {offsets = [0, 0, 8], sizes = [2, 8, 8], strides = [1, 1, 1]} : vector<2x8x32xbf16> to vector<2x8x8xbf16>
    "tpu.trace_start"() <{level = 10 : i32, message = "bqd,bkd->bqk"}> : () -> ()
    %cst_15 = arith.constant dense<0.000000e+00> : vector<2x8x8xf32>
    %40 = tpu.matmul %37, %38, %cst_15 {dimension_numbers = #tpu.dot_dimension_numbers<[2], [2], [1], [1], [0, 0, 0, 1, 1, 1], [0], [0]>} : vector<2x8x8xbf16>, vector<2x8x8xbf16>, vector<2x8x8xf32> -> vector<2x8x8xf32>
    "tpu.trace_stop"() : () -> ()
    %cst_16 = arith.constant dense<0xFF800000> : vector<2x8xf32>
    %41 = vector.multi_reduction <maximumf>, %40, %cst_16 [2] : vector<2x8x8xf32> to vector<2x8xf32>
    %42 = vector.shape_cast %41 : vector<2x8xf32> to vector<2x8x1xf32>
    %43 = vector.broadcast %42 : vector<2x8x1xf32> to vector<2x8x8xf32>
    %44 = arith.subf %40, %43 : vector<2x8x8xf32>
    %45 = math.exp %44 : vector<2x8x8xf32>
    %cst_17 = arith.constant dense<0.000000e+00> : vector<2x8xf32>
    %46 = vector.multi_reduction <add>, %45, %cst_17 [2] : vector<2x8x8xf32> to vector<2x8xf32>
    %47 = vector.shape_cast %46 : vector<2x8xf32> to vector<2x8x1xf32>
    %48 = tpu.reciprocal %47 {approx = true} : vector<2x8x1xf32> -> vector<2x8x1xf32>
    %49 = vector.broadcast %48 : vector<2x8x1xf32> to vector<2x8x8xf32>
    %50 = arith.mulf %45, %49 : vector<2x8x8xf32>
    %c1 = arith.constant 1 : index
    %c0_18 = arith.constant 0 : index
    %c0_19 = arith.constant 0 : index
    %51 = vector.load %arg3[%c1, %c0_18, %c0_19] : memref<4x8x8xf32, #tpu.memory_space<vmem>>, vector<1x8x8xf32>
    %52 = vector.shape_cast %51 : vector<1x8x8xf32> to vector<8x8xf32>
    %53 = vector.shape_cast %52 : vector<8x8xf32> to vector<1x8x8xf32>
    %54 = vector.broadcast %53 : vector<1x8x8xf32> to vector<2x8x8xf32>
    %55 = arith.addf %50, %54 : vector<2x8x8xf32>
    %56 = arith.truncf %55 : vector<2x8x8xf32> to vector<2x8x8xbf16>
    "tpu.trace_start"() <{level = 10 : i32, message = "bqk,bkd->bqd"}> : () -> ()
    %cst_20 = arith.constant dense<0.000000e+00> : vector<2x8x8xf32>
    %57 = tpu.matmul %56, %39, %cst_20 {dimension_numbers = #tpu.dot_dimension_numbers<[2], [1], [1], [2], [0, 0, 0, 1, 1, 2], [0], [0]>} : vector<2x8x8xbf16>, vector<2x8x8xbf16>, vector<2x8x8xf32> -> vector<2x8x8xf32>
    "tpu.trace_stop"() : () -> ()
    %c0_21 = arith.constant 0 : index
    %c0_22 = arith.constant 0 : index
    %c8 = arith.constant 8 : index
    %58 = vector.load %arg7[%c0_21, %c0_22, %c8] : memref<2x8x32xf32, #tpu.memory_space<vmem>>, vector<2x8x8xf32>
    tpu.vector_store %arg7[%c0_21, %c0_22, %c8], %57 {strides = array<i32>} : memref<2x8x32xf32, #tpu.memory_space<vmem>>, vector<2x8x8xf32>,
    %59 = vector.extract_strided_slice %8 {offsets = [0, 0, 16], sizes = [2, 8, 8], strides = [1, 1, 1]} : vector<2x8x32xbf16> to vector<2x8x8xbf16>
    %60 = vector.extract_strided_slice %11 {offsets = [0, 0, 16], sizes = [2, 8, 8], strides = [1, 1, 1]} : vector<2x8x32xbf16> to vector<2x8x8xbf16>
    %61 = vector.extract_strided_slice %14 {offsets = [0, 0, 16], sizes = [2, 8, 8], strides = [1, 1, 1]} : vector<2x8x32xbf16> to vector<2x8x8xbf16>
    "tpu.trace_start"() <{level = 10 : i32, message = "bqd,bkd->bqk"}> : () -> ()
    %cst_23 = arith.constant dense<0.000000e+00> : vector<2x8x8xf32>
    %62 = tpu.matmul %59, %60, %cst_23 {dimension_numbers = #tpu.dot_dimension_numbers<[2], [2], [1], [1], [0, 0, 0, 1, 1, 1], [0], [0]>} : vector<2x8x8xbf16>, vector<2x8x8xbf16>, vector<2x8x8xf32> -> vector<2x8x8xf32>
    "tpu.trace_stop"() : () -> ()
    %cst_24 = arith.constant dense<0xFF800000> : vector<2x8xf32>
    %63 = vector.multi_reduction <maximumf>, %62, %cst_24 [2] : vector<2x8x8xf32> to vector<2x8xf32>
    %64 = vector.shape_cast %63 : vector<2x8xf32> to vector<2x8x1xf32>
    %65 = vector.broadcast %64 : vector<2x8x1xf32> to vector<2x8x8xf32>
    %66 = arith.subf %62, %65 : vector<2x8x8xf32>
    %67 = math.exp %66 : vector<2x8x8xf32>
    %cst_25 = arith.constant dense<0.000000e+00> : vector<2x8xf32>
    %68 = vector.multi_reduction <add>, %67, %cst_25 [2] : vector<2x8x8xf32> to vector<2x8xf32>
    %69 = vector.shape_cast %68 : vector<2x8xf32> to vector<2x8x1xf32>
    %70 = tpu.reciprocal %69 {approx = true} : vector<2x8x1xf32> -> vector<2x8x1xf32>
    %71 = vector.broadcast %70 : vector<2x8x1xf32> to vector<2x8x8xf32>
    %72 = arith.mulf %67, %71 : vector<2x8x8xf32>
    %c2 = arith.constant 2 : index
    %c0_26 = arith.constant 0 : index
    %c0_27 = arith.constant 0 : index
    %73 = vector.load %arg3[%c2, %c0_26, %c0_27] : memref<4x8x8xf32, #tpu.memory_space<vmem>>, vector<1x8x8xf32>
    %74 = vector.shape_cast %73 : vector<1x8x8xf32> to vector<8x8xf32>
    %75 = vector.shape_cast %74 : vector<8x8xf32> to vector<1x8x8xf32>
    %76 = vector.broadcast %75 : vector<1x8x8xf32> to vector<2x8x8xf32>
    %77 = arith.addf %72, %76 : vector<2x8x8xf32>
    %78 = arith.truncf %77 : vector<2x8x8xf32> to vector<2x8x8xbf16>
    "tpu.trace_start"() <{level = 10 : i32, message = "bqk,bkd->bqd"}> : () -> ()
    %cst_28 = arith.constant dense<0.000000e+00> : vector<2x8x8xf32>
    %79 = tpu.matmul %78, %61, %cst_28 {dimension_numbers = #tpu.dot_dimension_numbers<[2], [1], [1], [2], [0, 0, 0, 1, 1, 2], [0], [0]>} : vector<2x8x8xbf16>, vector<2x8x8xbf16>, vector<2x8x8xf32> -> vector<2x8x8xf32>
    "tpu.trace_stop"() : () -> ()
    %c0_29 = arith.constant 0 : index
    %c0_30 = arith.constant 0 : index
    %c16 = arith.constant 16 : index
    %80 = vector.load %arg7[%c0_29, %c0_30, %c16] : memref<2x8x32xf32, #tpu.memory_space<vmem>>, vector<2x8x8xf32>
    tpu.vector_store %arg7[%c0_29, %c0_30, %c16], %79 {strides = array<i32>} : memref<2x8x32xf32, #tpu.memory_space<vmem>>, vector<2x8x8xf32>,
    %81 = vector.extract_strided_slice %8 {offsets = [0, 0, 24], sizes = [2, 8, 8], strides = [1, 1, 1]} : vector<2x8x32xbf16> to vector<2x8x8xbf16>
    %82 = vector.extract_strided_slice %11 {offsets = [0, 0, 24], sizes = [2, 8, 8], strides = [1, 1, 1]} : vector<2x8x32xbf16> to vector<2x8x8xbf16>
    %83 = vector.extract_strided_slice %14 {offsets = [0, 0, 24], sizes = [2, 8, 8], strides = [1, 1, 1]} : vector<2x8x32xbf16> to vector<2x8x8xbf16>
    "tpu.trace_start"() <{level = 10 : i32, message = "bqd,bkd->bqk"}> : () -> ()
    %cst_31 = arith.constant dense<0.000000e+00> : vector<2x8x8xf32>
    %84 = tpu.matmul %81, %82, %cst_31 {dimension_numbers = #tpu.dot_dimension_numbers<[2], [2], [1], [1], [0, 0, 0, 1, 1, 1], [0], [0]>} : vector<2x8x8xbf16>, vector<2x8x8xbf16>, vector<2x8x8xf32> -> vector<2x8x8xf32>
    "tpu.trace_stop"() : () -> ()
    %cst_32 = arith.constant dense<0xFF800000> : vector<2x8xf32>
    %85 = vector.multi_reduction <maximumf>, %84, %cst_32 [2] : vector<2x8x8xf32> to vector<2x8xf32>
    %86 = vector.shape_cast %85 : vector<2x8xf32> to vector<2x8x1xf32>
    %87 = vector.broadcast %86 : vector<2x8x1xf32> to vector<2x8x8xf32>
    %88 = arith.subf %84, %87 : vector<2x8x8xf32>
    %89 = math.exp %88 : vector<2x8x8xf32>
    %cst_33 = arith.constant dense<0.000000e+00> : vector<2x8xf32>
    %90 = vector.multi_reduction <add>, %89, %cst_33 [2] : vector<2x8x8xf32> to vector<2x8xf32>
    %91 = vector.shape_cast %90 : vector<2x8xf32> to vector<2x8x1xf32>
    %92 = tpu.reciprocal %91 {approx = true} : vector<2x8x1xf32> -> vector<2x8x1xf32>
    %93 = vector.broadcast %92 : vector<2x8x1xf32> to vector<2x8x8xf32>
    %94 = arith.mulf %89, %93 : vector<2x8x8xf32>
    %c3 = arith.constant 3 : index
    %c0_34 = arith.constant 0 : index
    %c0_35 = arith.constant 0 : index
    %95 = vector.load %arg3[%c3, %c0_34, %c0_35] : memref<4x8x8xf32, #tpu.memory_space<vmem>>, vector<1x8x8xf32>
    %96 = vector.shape_cast %95 : vector<1x8x8xf32> to vector<8x8xf32>
    %97 = vector.shape_cast %96 : vector<8x8xf32> to vector<1x8x8xf32>
    %98 = vector.broadcast %97 : vector<1x8x8xf32> to vector<2x8x8xf32>
    %99 = arith.addf %94, %98 : vector<2x8x8xf32>
    %100 = arith.truncf %99 : vector<2x8x8xf32> to vector<2x8x8xbf16>
    "tpu.trace_start"() <{level = 10 : i32, message = "bqk,bkd->bqd"}> : () -> ()
    %cst_36 = arith.constant dense<0.000000e+00> : vector<2x8x8xf32>
    %101 = tpu.matmul %100, %83, %cst_36 {dimension_numbers = #tpu.dot_dimension_numbers<[2], [1], [1], [2], [0, 0, 0, 1, 1, 2], [0], [0]>} : vector<2x8x8xbf16>, vector<2x8x8xbf16>, vector<2x8x8xf32> -> vector<2x8x8xf32>
    "tpu.trace_stop"() : () -> ()
    %c0_37 = arith.constant 0 : index
    %c0_38 = arith.constant 0 : index
    %c24 = arith.constant 24 : index
    %102 = vector.load %arg7[%c0_37, %c0_38, %c24] : memref<2x8x32xf32, #tpu.memory_space<vmem>>, vector<2x8x8xf32>
    tpu.vector_store %arg7[%c0_37, %c0_38, %c24], %101 {strides = array<i32>} : memref<2x8x32xf32, #tpu.memory_space<vmem>>, vector<2x8x8xf32>,
    %c0_39 = arith.constant 0 : index
    %c0_40 = arith.constant 0 : index
    %c0_41 = arith.constant 0 : index
    %103 = vector.load %arg7[%c0_39, %c0_40, %c0_41] : memref<2x8x32xf32, #tpu.memory_space<vmem>>, vector<2x8x32xf32>
    %cst_42 = arith.constant dense<0.000000e+00> : vector<2x8xf32>
    %104 = vector.multi_reduction <add>, %103, %cst_42 [2] : vector<2x8x32xf32> to vector<2x8xf32>
    %105 = vector.shape_cast %104 : vector<2x8xf32> to vector<2x8x1xf32>
    %cst_43 = arith.constant 3.200000e+01 : f32
    %106 = vector.broadcast %cst_43 : f32 to vector<2x8x1xf32>
    %107 = arith.divf %105, %106 : vector<2x8x1xf32>
    %108 = vector.broadcast %107 : vector<2x8x1xf32> to vector<2x8x32xf32>
    %109 = arith.subf %103, %108 : vector<2x8x32xf32>
    %110 = arith.mulf %109, %109 : vector<2x8x32xf32>
    %cst_44 = arith.constant dense<0.000000e+00> : vector<2x8xf32>
    %111 = vector.multi_reduction <add>, %110, %cst_44 [2] : vector<2x8x32xf32> to vector<2x8xf32>
    %112 = vector.shape_cast %111 : vector<2x8xf32> to vector<2x8x1xf32>
    %cst_45 = arith.constant 3.200000e+01 : f32
    %113 = vector.broadcast %cst_45 : f32 to vector<2x8x1xf32>
    %114 = arith.divf %112, %113 : vector<2x8x1xf32>
    %115 = vector.broadcast %107 : vector<2x8x1xf32> to vector<2x8x32xf32>
    %116 = arith.subf %103, %115 : vector<2x8x32xf32>
    %cst_46 = arith.constant 9.99999974E-6 : f32
    %117 = vector.broadcast %cst_46 : f32 to vector<2x8x1xf32>
    %118 = arith.addf %114, %117 : vector<2x8x1xf32>
    %119 = math.rsqrt %118 : vector<2x8x1xf32>
    %120 = vector.broadcast %119 : vector<2x8x1xf32> to vector<2x8x32xf32>
    %121 = arith.mulf %116, %120 : vector<2x8x32xf32>
    %c0_47 = arith.constant 0 : index
    %c0_48 = arith.constant 0 : index
    %122 = vector.load %arg4[%c0_47, %c0_48] : memref<1x32xf32, #tpu.memory_space<vmem>>, vector<1x32xf32>
    %123 = vector.shape_cast %122 : vector<1x32xf32> to vector<32xf32>
    %124 = vector.shape_cast %123 : vector<32xf32> to vector<1x1x32xf32>
    %125 = vector.broadcast %124 : vector<1x1x32xf32> to vector<2x8x32xf32>
    %126 = arith.mulf %121, %125 : vector<2x8x32xf32>
    %c0_49 = arith.constant 0 : index
    %c0_50 = arith.constant 0 : index
    %127 = vector.load %arg5[%c0_49, %c0_50] : memref<1x32xf32, #tpu.memory_space<vmem>>, vector<1x32xf32>
    %128 = vector.shape_cast %127 : vector<1x32xf32> to vector<32xf32>
    %129 = vector.shape_cast %128 : vector<32xf32> to vector<1x1x32xf32>
    %130 = vector.broadcast %129 : vector<1x1x32xf32> to vector<2x8x32xf32>
    %131 = arith.addf %126, %130 : vector<2x8x32xf32>
    %132 = vector.shape_cast %131 : vector<2x8x32xf32> to vector<2x256xf32>
    %c0_51 = arith.constant 0 : index
    %c0_52 = arith.constant 0 : index
    %133 = vector.load %arg6[%c0_51, %c0_52] : memref<2x256xf32, #tpu.memory_space<vmem>>, vector<2x256xf32>
    tpu.vector_store %arg6[%c0_51, %c0_52], %132 {strides = array<i32>} : memref<2x256xf32, #tpu.memory_space<vmem>>, vector<2x256xf32>,
    return
  }
  func.func @transform_0(%arg0: i32) -> (i32, i32, i32) {
    %c0_i32 = arith.constant 0 : i32
    %c0_i32_0 = arith.constant 0 : i32
    %c0_i32_1 = arith.constant 0 : i32
    return %arg0, %c0_i32, %c0_i32_0 : i32, i32, i32
  }
  func.func @transform_1(%arg0: i32) -> (i32, i32) {
    %c0_i32 = arith.constant 0 : i32
    %c0_i32_0 = arith.constant 0 : i32
    %c0_i32_1 = arith.constant 0 : i32
    return %c0_i32, %c0_i32_0 : i32, i32
  }
  func.func @transform_2(%arg0: i32) -> (i32, i32, i32) {
    %c0_i32 = arith.constant 0 : i32
    %c0_i32_0 = arith.constant 0 : i32
    %c0_i32_1 = arith.constant 0 : i32
    %c0_i32_2 = arith.constant 0 : i32
    return %c0_i32, %c0_i32_0, %c0_i32_1 : i32, i32, i32
  }
  func.func @transform_3(%arg0: i32) -> (i32, i32) {
    %c0_i32 = arith.constant 0 : i32
    %c0_i32_0 = arith.constant 0 : i32
    %c0_i32_1 = arith.constant 0 : i32
    return %c0_i32, %c0_i32_0 : i32, i32
  }
  func.func @transform_4(%arg0: i32) -> (i32, i32) {
    %c0_i32 = arith.constant 0 : i32
    %c0_i32_0 = arith.constant 0 : i32
    %c0_i32_1 = arith.constant 0 : i32
    return %c0_i32, %c0_i32_0 : i32, i32
  }
  func.func @transform_5(%arg0: i32) -> (i32, i32) {
    %c0_i32 = arith.constant 0 : i32
    %c0_i32_0 = arith.constant 0 : i32
    return %arg0, %c0_i32 : i32, i32
  }
}

</mosaic_0001>

<bundles_post_ra>
// kernel: tpu_custom_call.1
= control target key start
LH: loop header
LB: loop body
LE: loop exit
PB: predicated region body
PF: predicated region fallthrough
CT: control target
= control target key end

     0   :  { %10 = vsyncpa [#allocation4], 0  ;;  %s1862_s0 = inlined_call_operand.hbm [shape: bf16[2,8,32], index: 0, kind: input, shape index: {}]   ;;  %s1863_s1 = inlined_call_operand.hbm [shape: bf16[32,96], index: 1, kind: input, shape index: {}]   ;;  %s1864_s2 = inlined_call_operand.hbm [shape: f32[4,8,8], index: 2, kind: input, shape index: {}]   ;;  %s1865_s3 = inlined_call_operand.vmem [shape: f32[1,32], index: 3, kind: input, shape index: {}]   ;;  %s1866_s4 = inlined_call_operand.vmem [shape: f32[1,32], index: 4, kind: input, shape index: {}]   ;;  %s1867_s5 = inlined_call_operand.hbm [shape: f32[2,256], index: 5, kind: output, shape index: {}]  }
   0x1   :  { %11 = vsyncpa [#allocation7], 0 }
   0x2   :  { %12 = vsyncpa [#allocation5], 0  ;;  %s1574_s18 = smov [#allocation6]   ;;  %s1575_s20 = smov [#allocation3]  }
   0x3   :  { %s30_s19 = sshll.u32 %s1574_s18, 4  ;;  %s18_s21 = sshll.u32 %s1575_s20, 4  ;;  %s31_s19 = int_to_ptr.vmem [resolvable:$true] %s30_s19  ;;  %s1629_s21 = int_to_ptr.vmem [resolvable:$true] %s18_s21 }
   0x4   :  { %s1480_s24 = scalar_lea.hbm %s1863_s1, 256 }
   0x5   :  { %p1481_p0 = scmp.ne.s32.totalorder %s1863_s1, %s1480_s24  ;;  %p1484_p1 = scmp.lt.u32.totalorder %s1480_s24, %s1863_s1 }
   0x7   :  { %p1486_p2 = pnand %p1484_p1, %p1481_p0 }
   0x9   :  { %1489 = shalt.err (!%p1486_p2)
}
   0xa   :  { %s1490_s29 = scalar_lea.vmem %s31_s19, 256  ;;  %p1495_p4 = scmp.lt.s32.totalorder %s31_s19, %s31_s19 }
   0xb   :  { %p1491_p3 = scmp.ne.s32.totalorder %s31_s19, %s1490_s29  ;;  %p1496_p5 = scmp.lt.s32.totalorder %s1490_s29, %s1490_s29 }
   0xd   :  { %p1497_p6 = por %p1496_p5, %p1495_p4 }
   0xf   :  { %p1498_p7 = pnand %p1497_p6, %p1491_p3 }
  0x11   :  { %1501 = shalt.err (!%p1498_p7)
}
  0x12   :  { %s1576_s30 = smov 64   ;;  %s1577_s6 = smov 4  }
  0x13   :  { %36 = dma.hbm_to_vmem [thread:$0]  %s1863_s1, 256, %s31_s19, [#allocation7], %s1576_s30, %s1576_s30, %s1577_s6  }
  0x14   :  { %s1502_s11 = scalar_lea.hbm %s1862_s0, 128 }
  0x15   :  { %p1503_p8 = scmp.ne.s32.totalorder %s1862_s0, %s1502_s11  ;;  %p1506_p9 = scmp.lt.u32.totalorder %s1502_s11, %s1862_s0 }
  0x17   :  { %p1508_p10 = pnand %p1506_p9, %p1503_p8 }
  0x19   :  { %1511 = shalt.err (!%p1508_p10)
}
  0x1a   :  { %s1512_s16 = scalar_lea.vmem %s1629_s21, 128  ;;  %p1517_p12 = scmp.lt.s32.totalorder %s1629_s21, %s1629_s21 }
  0x1b   :  { %p1513_p11 = scmp.ne.s32.totalorder %s1629_s21, %s1512_s16  ;;  %p1518_p13 = scmp.lt.s32.totalorder %s1512_s16, %s1512_s16 }
  0x1d   :  { %p1519_p0 = por %p1518_p13, %p1517_p12 }
  0x1f   :  { %p1520_p1 = pnand %p1519_p0, %p1513_p11 }
  0x21   :  { %1523 = shalt.err (!%p1520_p1)
}
  0x22   :  { %24 = dma.hbm_to_vmem [thread:$0]  %s1862_s0, 128, %s1629_s21, [#allocation4], %s1576_s30, %s1576_s30, %s1577_s6  }
  0x23   :  { %s1578_s18 = smov [#allocation8]   ;;  %s1524_s23 = scalar_lea.hbm %s1864_s2, 512 }
  0x24   :  { %s42_s19 = sshll.u32 %s1578_s18, 4  ;;  %p1525_p2 = scmp.ne.s32.totalorder %s1864_s2, %s1524_s23  ;;  %s43_s19 = int_to_ptr.vmem [resolvable:$true] %s42_s19 }
  0x25   :  { %p1528_p3 = scmp.lt.u32.totalorder %s1524_s23, %s1864_s2 }
  0x27   :  { %p1530_p4 = pnand %p1528_p3, %p1525_p2 }
  0x29   :  { %1533 = shalt.err (!%p1530_p4)
}
  0x2a   :  { %s1534_s28 = scalar_lea.vmem %s43_s19, 512  ;;  %p1539_p6 = scmp.lt.s32.totalorder %s43_s19, %s43_s19 }
  0x2b   :  { %p1535_p5 = scmp.ne.s32.totalorder %s43_s19, %s1534_s28  ;;  %p1540_p7 = scmp.lt.s32.totalorder %s1534_s28, %s1534_s28 }
  0x2d   :  { %p1541_p8 = por %p1540_p7, %p1539_p6 }
  0x2f   :  { %p1542_p9 = pnand %p1541_p8, %p1535_p5 }
  0x31   :  { %1545 = shalt.err (!%p1542_p9)
}
  0x32   :  { %s1579_s0 = smov 128   ;;  %s1580_s21 = smov 8  }
  0x33   :  { %48 = dma.hbm_to_vmem [thread:$0]  %s1864_s2, 512, %s43_s19, [#allocation7], %s1579_s0, %s1579_s0, %s1580_s21  }
  0x34   :  { %1568 = dma.done.wait [#allocation4], 128  }
  0x35   :  { %1569 = vsyncadd [#allocation4], 4294967168 }
  0x36   :  { %1570 = dma.done.wait [#allocation7], 768  }
  0x37   :  { %1571 = vsyncadd [#allocation7], 4294966528  ;;  %v1581_v0 = vmov 0.0   ;;  %vm1582_vm0 = vmmov 0   ;;  %v1441_v1 = vld [vmem:[#allocation6] sm:$0xff]   ;;  %v1442_v2 = vld [vmem:[#allocation6 + $0x8] sm:$0xff]  }
  0x38   :  { %1312 = vmatprep.subr.bf16.mxu0 %v1581_v0  ;;  %1316 = vmatprep.mubr.msk.bf16.mxu0 %vm1582_vm0, %v1581_v0  ;;  %v1443_v3 = vld [vmem:[#allocation3] sm:$0xff]   ;;  %vm86_vm1 = vcmask 261120   ;;  %s1583_s2 = smov 96   ;;  %vm146_vm2 = vcmask 64512   ;;  %s1584_s7 = smov 88   ;;  %vm274_vm3 = vcmask 1043456  }
  0x39   :  { %1320 = vmatprep.subr.bf16.mxu1 %v1581_v0  ;;  %1322 = vmatprep.mubr.msk.bf16.mxu1 %vm1582_vm0, %v1581_v0  ;;  %s1585_s8 = smov 120   ;;  %v264_v46 = vld [vmem:[#allocation8] sm:$0xff]  ;;  %s1586_s9 = smov 56   ;;  %vm600_vm4 = vcmask 130112   ;;  %vm835_vm5 = vcmask 195712   ;;  %vm1070_vm6 = vcmask 261312  }
  0x3a   :  { %1313 = vmatpush3.bf16.msra.mxu0 %v1441_v1  ;;  %s1587_s10 = smov 80   ;;  %s1588_s11 = smov 112   ;;  %vm1211_vm7 = vcmask 523264   ;;  %vm1213_vm8 = vcmask 785408  }
  0x3b   :  { %1314 = vmatprep.subr.bf16.mxu0 %v1581_v0  ;;  %s1589_s12 = smov 48   ;;  %s1590_s13 = smov 72  }
  0x3c   :  { %s1591_s14 = smov 104   ;;  %s1592_s15 = smov 40  }
  0x3d   :  { %s1593_s16 = smov 16   ;;  %s1594_s1 = smov 24  }
  0x3e   :  { %1315 = vmatpush3.bf16.msra.mxu0 %v1442_v2 }
  0x3f   :  { %1326 = vmatprep.subr.bf16.mxu0 %v1581_v0 }
  0x41   :  { %1317 = vmatmul.mubr.msk.bf16.vlgmr.msra.gmra.mrb[0].mxu0 %vm86_vm1, %v1443_v3 }
  0x42   :  { %1328 = vmatprep.mubr.msk.bf16.mxu0 %vm1582_vm0, %v1581_v0 }
 0x114   :  { %v124_v4 = vpop.f32.mrb[0].mxu0 }
 0x115   :  { %v1688_v5 = vpack.c.bf16 %v124_v4, %v124_v4  ;;  %v1318_v6 = vpop.f32.mrb[1].mxu0  ;;  %v131_v12 = vmul.f32 0.17677669, %v124_v4 }
 0x116   :  { %v127_v7 = vpop.f32.mrb[2].mxu0 }
 0x117   :  { %144 = vrot.lane.b32.xlu0 %v1688_v5, %s1583_s2  ;;  %v1319_v8 = vpop.f32.mrb[3].mxu0  ;;  %v1692_v9 = vpack.c.bf16 %v127_v7, %v127_v7  ;;  %v1699_v15 = vpack.c.bf16 %v131_v12, %v131_v12  ;;  %v132_v16 = vmul.f32 0.17677669, %v127_v7 }
 0x119   :  { %v1706_v17 = vpack.c.bf16 %v132_v16, %v132_v16 }
 0x11b   :  { %194 = vrot.lane.b32.xlu0 %v1692_v9, %s1583_s2 }
 0x189   :  { %v145_v10 = vpop.permute.xlu0 %144 }
 0x18a   :  { %v151_v11 = vsel %vm146_vm2, %v145_v10, 0 }
 0x18b   :  { %1321 = vmatpush3.bf16.xpose.msra.mxu1 %v151_v11 }
 0x18c   :  { %1332 = vmatprep.subr.bf16.mxu1 %v1581_v0 }
 0x18d   :  { %v195_v13 = vpop.permute.xlu0 %194 }
 0x18e   :  { %v200_v14 = vsel %vm146_vm2, %v195_v13, 0 }
 0x18f   :  { %1327 = vmatpush3.bf16.xpose.msra.mxu0 %v200_v14 }
 0x190   :  { %1338 = vmatprep.subr.bf16.mxu0 %v1581_v0 }
 0x192   :  { %1323 = vmatmul.mubr.msk.bf16.vlgmr.msra.gmra.mrb[0].mxu1 %vm146_vm2, %v1699_v15 }
 0x193   :  { %1334 = vmatprep.mubr.msk.bf16.mxu1 %vm1582_vm0, %v1581_v0 }
 0x196   :  { %1329 = vmatmul.mubr.msk.bf16.vlgmr.msra.gmra.mrb[4].mxu0 %vm146_vm2, %v1706_v17 }
 0x197   :  { %1340 = vmatprep.mubr.msk.bf16.mxu0 %vm1582_vm0, %v1581_v0 }
 0x265   :  { %v187_v18 = vpop.f32.mrb[0].mxu1 }
 0x266   :  { %v1324_v19 = vpop.f32.mrb[1].mxu1  ;;  %v242_v20 = vsel %vm146_vm2, %v187_v18, -inf }
 0x267   :  { %243 = vmax.xlane.f32.xlu1 %v242_v20  ;;  %v190_v21 = vpop.f32.mrb[2].mxu1 }
 0x268   :  { %v1325_v22 = vpop.f32.mrb[3].mxu1 }
 0x269   :  { %v236_v23 = vpop.f32.mrb[4].mxu0 }
 0x26a   :  { %v1330_v24 = vpop.f32.mrb[5].mxu0  ;;  %v245_v25 = vsel %vm146_vm2, %v236_v23, -inf }
 0x26b   :  { %246 = vmax.xlane.f32.xlu1 %v245_v25  ;;  %v239_v26 = vpop.f32.mrb[6].mxu0 }
 0x26c   :  { %v1331_v27 = vpop.f32.mrb[7].mxu0 }
 0x27c   :  { %269 = vrot.lane.b32.xlu1 %v1688_v5, %s1576_s30 }
 0x280   :  { %318 = vrot.lane.b32.xlu1 %v1692_v9, %s1576_s30 }
 0x284   :  { %370 = vrot.lane.b32.xlu1 %v1688_v5, %s1584_s7 }
 0x2f4   :  { %v244_v28 = vpop.xlane.xlu1 %243 }
 0x2f5   :  { %v248_v29 = vsub.f32 %v187_v18, %v244_v28 }
 0x2f7   :  { %v250_v30 = vmul.f32 1.442695, %v248_v29 }
 0x2f8   :  { %v247_v31 = vpop.xlane.xlu1 %246 }
 0x2f9   :  { %1444 = vpow2.f32 %v250_v30  ;;  %v249_v32 = vsub.f32 %v236_v23, %v247_v31 }
 0x2fb   :  { %v252_v33 = vmul.f32 1.442695, %v249_v32 }
 0x2fc   :  { %v270_v34 = vpop.permute.xlu1 %269 }
 0x2fd   :  { %1446 = vpow2.f32 %v252_v33  ;;  %v276_v35 = vsel %vm274_vm3, %v270_v34, 0 }
 0x2fe   :  { %1333 = vmatpush3.bf16.msra.mxu1 %v276_v35 }
 0x2ff   :  { %1344 = vmatprep.subr.bf16.mxu1 %v1581_v0 }
 0x300   :  { %v319_v36 = vpop.permute.xlu1 %318 }
 0x301   :  { %v324_v37 = vsel %vm274_vm3, %v319_v36, 0  ;;  %v491_v36 = vld [vmem:[#allocation8 + $0x8] sm:$0xff] }
 0x302   :  { %1339 = vmatpush3.bf16.msra.mxu0 %v324_v37 }
 0x303   :  { %v1445_v38 = vpop.eup %1444  ;;  %1350 = vmatprep.subr.bf16.mxu0 %v1581_v0 }
 0x304   :  { %v254_v39 = vsel %vm146_vm2, %v1445_v38, 0.0  ;;  %v371_v42 = vpop.permute.xlu1 %370 }
 0x305   :  { %255 = vadd.xlane.f32.xlu0 %v254_v39  ;;  %v376_v52 = vsel %vm146_vm2, %v371_v42, 0 }
 0x307   :  { %v1447_v40 = vpop.eup %1446 }
 0x308   :  { %v257_v41 = vsel %vm146_vm2, %v1447_v40, 0.0 }
 0x309   :  { %258 = vadd.xlane.f32.xlu1 %v257_v41 }
 0x31a   :  { %420 = vrot.lane.b32.xlu1 %v1692_v9, %s1584_s7 }
 0x31b   :  { %368 = vrot.lane.b32.xlu0 %v1699_v15, %s1585_s8 }
 0x31e   :  { %418 = vrot.lane.b32.xlu1 %v1706_v17, %s1585_s8 }
 0x392   :  { %v256_v43 = vpop.xlane.xlu0 %255 }
 0x393   :  { %1448 = vrcp.f32 %v256_v43 }
 0x396   :  { %v259_v44 = vpop.xlane.xlu1 %258  ;;  %v369_v57 = vpop.permute.xlu0 %368 }
 0x397   :  { %1450 = vrcp.f32 %v259_v44 }
 0x39a   :  { %v421_v54 = vpop.permute.xlu1 %420 }
 0x39b   :  { %v426_v56 = vsel %vm146_vm2, %v421_v54, 0 }
 0x39d   :  { %v1449_v45 = vpop.eup %1448 }
 0x39e   :  { %v262_v47 = vmul.f32 %v1449_v45, %v1445_v38  ;;  %v419_v58 = vpop.permute.xlu1 %418 }
 0x3a0   :  { %v265_v48 = vadd.f32 %v264_v46, %v262_v47 }
 0x3a1   :  { %v1451_v49 = vpop.eup %1450 }
 0x3a2   :  { %v263_v50 = vmul.f32 %v1451_v49, %v1447_v40  ;;  %v267_v51 = vpack.c.bf16 %v265_v48, %v265_v48 }
 0x3a4   :  { %1335 = vmatmul.mubr.msk.bf16.vlgmr.msra.gmra.mrb[4].mxu1 %vm146_vm2, %v267_v51  ;;  %v266_v53 = vadd.f32 %v264_v46, %v263_v50 }
 0x3a5   :  { %1345 = vmatpush3.bf16.xpose.msra.mxu1 %v376_v52  ;;  %1346 = vmatprep.mubr.msk.bf16.mxu1 %vm1582_vm0, %v1581_v0 }
 0x3a6   :  { %v268_v55 = vpack.c.bf16 %v266_v53, %v266_v53  ;;  %1356 = vmatprep.subr.bf16.mxu1 %v1581_v0 }
 0x3a8   :  { %1341 = vmatmul.mubr.msk.bf16.vlgmr.msra.gmra.mrb[8].mxu0 %vm146_vm2, %v268_v55 }
 0x3a9   :  { %1351 = vmatpush3.bf16.xpose.msra.mxu0 %v426_v56  ;;  %1352 = vmatprep.mubr.msk.bf16.mxu0 %vm1582_vm0, %v1581_v0 }
 0x3aa   :  { %1362 = vmatprep.subr.bf16.mxu0 %v1581_v0 }
 0x3ac   :  { %1347 = vmatmul.mubr.msk.bf16.vlgmr.msra.gmra.mrb[8].mxu1 %vm146_vm2, %v369_v57 }
 0x3ad   :  { %1358 = vmatprep.mubr.msk.bf16.mxu1 %vm1582_vm0, %v1581_v0 }
 0x3b0   :  { %1353 = vmatmul.mubr.msk.bf16.vlgmr.msra.gmra.mrb[12].mxu0 %vm146_vm2, %v419_v58 }
 0x3b1   :  { %1364 = vmatprep.mubr.msk.bf16.mxu0 %vm1582_vm0, %v1581_v0 }
 0x477   :  { %v312_v59 = vpop.f32.mrb[4].mxu1 }
 0x478   :  { %366 = vst.msk [vmem:[#allocation2] sm:$0xff] %vm146_vm2, %v312_v59  ;;  %v1336_v60 = vpop.f32.mrb[5].mxu1 }
 0x479   :  { %v315_v61 = vpop.f32.mrb[6].mxu1 }
 0x47a   :  { %v1337_v62 = vpop.f32.mrb[7].mxu1 }
 0x47b   :  { %v360_v63 = vpop.f32.mrb[8].mxu0 }
 0x47c   :  { %367 = vst.msk [vmem:[#allocation2 + $0x8] sm:$0xff] %vm146_vm2, %v360_v63  ;;  %v1342_v1 = vpop.f32.mrb[9].mxu0 }
 0x47d   :  { %v363_v2 = vpop.f32.mrb[10].mxu0 }
 0x47e   :  { %v1343_v3 = vpop.f32.mrb[11].mxu0 }
 0x47f   :  { %v412_v4 = vpop.f32.mrb[8].mxu1 }
 0x480   :  { %v1348_v6 = vpop.f32.mrb[9].mxu1  ;;  %v468_v7 = vsel %vm146_vm2, %v412_v4, -inf }
 0x481   :  { %469 = vmax.xlane.f32.xlu1 %v468_v7  ;;  %v415_v8 = vpop.f32.mrb[10].mxu1 }
 0x482   :  { %v1349_v10 = vpop.f32.mrb[11].mxu1 }
 0x483   :  { %v462_v11 = vpop.f32.mrb[12].mxu0 }
 0x484   :  { %v1354_v12 = vpop.f32.mrb[13].mxu0  ;;  %v471_v13 = vsel %vm146_vm2, %v462_v11, -inf }
 0x485   :  { %472 = vmax.xlane.f32.xlu0 %v471_v13  ;;  %v465_v14 = vpop.f32.mrb[14].mxu0 }
 0x486   :  { %v1355_v16 = vpop.f32.mrb[15].mxu0 }
 0x492   :  { %496 = vrot.lane.b32.xlu1 %v1688_v5, %s1586_s9 }
 0x496   :  { %605 = vrot.lane.b32.xlu1 %v1688_v5, %s1587_s10 }
 0x49b   :  { %544 = vrot.lane.b32.xlu0 %v1692_v9, %s1586_s9 }
 0x49f   :  { %603 = vrot.lane.b32.xlu0 %v1699_v15, %s1588_s11 }
 0x50e   :  { %v470_v18 = vpop.xlane.xlu1 %469 }
 0x50f   :  { %v474_v19 = vsub.f32 %v412_v4, %v470_v18 }
 0x511   :  { %v476_v20 = vmul.f32 1.442695, %v474_v19 }
 0x512   :  { %v497_v21 = vpop.permute.xlu1 %496  ;;  %v473_v22 = vpop.xlane.xlu0 %472 }
 0x513   :  { %1452 = vpow2.f32 %v476_v20  ;;  %v502_v23 = vsel %vm274_vm3, %v497_v21, 0  ;;  %v475_v24 = vsub.f32 %v462_v11, %v473_v22 }
 0x514   :  { %1357 = vmatpush3.bf16.msra.mxu1 %v502_v23 }
 0x515   :  { %v478_v25 = vmul.f32 1.442695, %v475_v24  ;;  %1368 = vmatprep.subr.bf16.mxu1 %v1581_v0  ;;  %v726_v24 = vld [vmem:[#allocation8 + $0x10] sm:$0xff] }
 0x516   :  { %v545_v26 = vpop.permute.xlu0 %544  ;;  %v606_v32 = vpop.permute.xlu1 %605 }
 0x517   :  { %1454 = vpow2.f32 %v478_v25  ;;  %v550_v27 = vsel %vm274_vm3, %v545_v26, 0  ;;  %v611_v42 = vsel %vm146_vm2, %v606_v32, 0 }
 0x518   :  { %1363 = vmatpush3.bf16.msra.mxu0 %v550_v27 }
 0x519   :  { %1374 = vmatprep.subr.bf16.mxu0 %v1581_v0 }
 0x51a   :  { %v604_v47 = vpop.permute.xlu0 %603 }
 0x51d   :  { %v1453_v28 = vpop.eup %1452 }
 0x51e   :  { %v480_v29 = vsel %vm146_vm2, %v1453_v28, 0.0 }
 0x51f   :  { %481 = vadd.xlane.f32.xlu1 %v480_v29 }
 0x521   :  { %v1455_v30 = vpop.eup %1454 }
 0x522   :  { %v483_v31 = vsel %vm146_vm2, %v1455_v30, 0.0 }
 0x523   :  { %484 = vadd.xlane.f32.xlu1 %v483_v31 }
 0x534   :  { %655 = vrot.lane.b32.xlu1 %v1692_v9, %s1587_s10 }
 0x538   :  { %653 = vrot.lane.b32.xlu1 %v1706_v17, %s1588_s11 }
 0x5ac   :  { %v482_v33 = vpop.xlane.xlu1 %481 }
 0x5ad   :  { %1456 = vrcp.f32 %v482_v33 }
 0x5b0   :  { %v485_v34 = vpop.xlane.xlu1 %484 }
 0x5b1   :  { %1458 = vrcp.f32 %v485_v34 }
 0x5b4   :  { %v656_v44 = vpop.permute.xlu1 %655 }
 0x5b5   :  { %v661_v46 = vsel %vm146_vm2, %v656_v44, 0 }
 0x5b7   :  { %v1457_v35 = vpop.eup %1456 }
 0x5b8   :  { %v488_v37 = vmul.f32 %v1457_v35, %v1453_v28  ;;  %v654_v48 = vpop.permute.xlu1 %653 }
 0x5ba   :  { %v492_v38 = vadd.f32 %v491_v36, %v488_v37 }
 0x5bb   :  { %v1459_v39 = vpop.eup %1458 }
 0x5bc   :  { %v489_v40 = vmul.f32 %v1459_v39, %v1455_v30  ;;  %v494_v41 = vpack.c.bf16 %v492_v38, %v492_v38 }
 0x5be   :  { %1359 = vmatmul.mubr.msk.bf16.vlgmr.msra.gmra.mrb[12].mxu1 %vm146_vm2, %v494_v41  ;;  %v493_v43 = vadd.f32 %v491_v36, %v489_v40 }
 0x5bf   :  { %1369 = vmatpush3.bf16.xpose.msra.mxu1 %v611_v42  ;;  %1370 = vmatprep.mubr.msk.bf16.mxu1 %vm1582_vm0, %v1581_v0 }
 0x5c0   :  { %v495_v45 = vpack.c.bf16 %v493_v43, %v493_v43  ;;  %1380 = vmatprep.subr.bf16.mxu1 %v1581_v0 }
 0x5c2   :  { %1365 = vmatmul.mubr.msk.bf16.vlgmr.msra.gmra.mrb[16].mxu0 %vm146_vm2, %v495_v45 }
 0x5c3   :  { %1375 = vmatpush3.bf16.xpose.msra.mxu0 %v661_v46  ;;  %1376 = vmatprep.mubr.msk.bf16.mxu0 %vm1582_vm0, %v1581_v0 }
 0x5c4   :  { %1386 = vmatprep.subr.bf16.mxu0 %v1581_v0 }
 0x5c6   :  { %1371 = vmatmul.mubr.msk.bf16.vlgmr.msra.gmra.mrb[16].mxu1 %vm146_vm2, %v604_v47 }
 0x5c7   :  { %1382 = vmatprep.mubr.msk.bf16.mxu1 %vm1582_vm0, %v1581_v0 }
 0x5ca   :  { %1377 = vmatmul.mubr.msk.bf16.vlgmr.msra.gmra.mrb[20].mxu0 %vm146_vm2, %v654_v48 }
 0x5cb   :  { %1388 = vmatprep.mubr.msk.bf16.mxu0 %vm1582_vm0, %v1581_v0 }
 0x691   :  { %v1776_v49 = vpop.f32.mrb[12].mxu1 }
 0x692   :  { %v1360_v50 = vpop.f32.mrb[13].mxu1 }
 0x693   :  { %v541_v51 = vpop.f32.mrb[14].mxu1 }
 0x694   :  { %v1361_v52 = vpop.f32.mrb[15].mxu1 }
 0x695   :  { %v1778_v53 = vpop.f32.mrb[16].mxu0 }
 0x696   :  { %v1366_v54 = vpop.f32.mrb[17].mxu0 }
 0x697   :  { %v589_v55 = vpop.f32.mrb[18].mxu0 }
 0x698   :  { %v1367_v56 = vpop.f32.mrb[19].mxu0 }
 0x699   :  { %v647_v57 = vpop.f32.mrb[16].mxu1 }
 0x69a   :  { %v1372_v58 = vpop.f32.mrb[17].mxu1  ;;  %v703_v59 = vsel %vm146_vm2, %v647_v57, -inf }
 0x69b   :  { %704 = vmax.xlane.f32.xlu0 %v703_v59  ;;  %v650_v60 = vpop.f32.mrb[18].mxu1 }
 0x69c   :  { %v1373_v61 = vpop.f32.mrb[19].mxu1 }
 0x69d   :  { %v697_v62 = vpop.f32.mrb[20].mxu0 }
 0x69e   :  { %v1378_v63 = vpop.f32.mrb[21].mxu0  ;;  %v706_v1 = vsel %vm146_vm2, %v697_v62, -inf }
 0x69f   :  { %707 = vmax.xlane.f32.xlu1 %v706_v1  ;;  %v700_v2 = vpop.f32.mrb[22].mxu0 }
 0x6a0   :  { %v1379_v3 = vpop.f32.mrb[23].mxu0 }
 0x6b0   :  { %731 = vrot.lane.b32.xlu1 %v1688_v5, %s1589_s12 }
 0x6b4   :  { %840 = vrot.lane.b32.xlu1 %v1688_v5, %s1590_s13 }
 0x6b8   :  { %890 = vrot.lane.b32.xlu1 %v1692_v9, %s1590_s13 }
 0x6bc   :  { %888 = vrot.lane.b32.xlu1 %v1706_v17, %s1591_s14 }
 0x728   :  { %v705_v4 = vpop.xlane.xlu0 %704 }
 0x729   :  { %v709_v6 = vsub.f32 %v647_v57, %v705_v4 }
 0x72b   :  { %v711_v7 = vmul.f32 1.442695, %v709_v6 }
 0x72c   :  { %v708_v8 = vpop.xlane.xlu1 %707 }
 0x72d   :  { %1460 = vpow2.f32 %v711_v7  ;;  %v710_v10 = vsub.f32 %v697_v62, %v708_v8 }
 0x72f   :  { %v713_v11 = vmul.f32 1.442695, %v710_v10 }
 0x730   :  { %v732_v12 = vpop.permute.xlu1 %731 }
 0x731   :  { %1462 = vpow2.f32 %v713_v11  ;;  %v737_v13 = vsel %vm274_vm3, %v732_v12, 0 }
 0x732   :  { %1381 = vmatpush3.bf16.msra.mxu1 %v737_v13  ;;  %v961_v13 = vld [vmem:[#allocation8 + $0x18] sm:$0xff] }
 0x733   :  { %1392 = vmatprep.subr.bf16.mxu1 %v1581_v0 }
 0x734   :  { %v841_v26 = vpop.permute.xlu1 %840 }
 0x737   :  { %v1461_v14 = vpop.eup %1460 }
 0x738   :  { %v715_v16 = vsel %vm146_vm2, %v1461_v14, 0.0  ;;  %v891_v32 = vpop.permute.xlu1 %890 }
 0x739   :  { %716 = vadd.xlane.f32.xlu0 %v715_v16  ;;  %v896_v34 = vsel %vm146_vm2, %v891_v32, 0 }
 0x73b   :  { %v1463_v18 = vpop.eup %1462 }
 0x73c   :  { %v718_v17 = vsel %vm146_vm2, %v1463_v18, 0.0  ;;  %v889_v36 = vpop.permute.xlu1 %888 }
 0x73d   :  { %719 = vadd.xlane.f32.xlu0 %v718_v17 }
 0x753   :  { %779 = vrot.lane.b32.xlu0 %v1692_v9, %s1589_s12 }
 0x757   :  { %838 = vrot.lane.b32.xlu0 %v1699_v15, %s1591_s14  ;;  %v846_v15 = vsel %vm146_vm2, %v841_v26, 0 }
 0x7c6   :  { %v717_v19 = vpop.xlane.xlu0 %716 }
 0x7c7   :  { %1464 = vrcp.f32 %v717_v19 }
 0x7ca   :  { %v720_v20 = vpop.xlane.xlu0 %719 }
 0x7cb   :  { %1466 = vrcp.f32 %v720_v20 }
 0x7ce   :  { %v780_v21 = vpop.permute.xlu0 %779 }
 0x7cf   :  { %v785_v22 = vsel %vm274_vm3, %v780_v21, 0 }
 0x7d0   :  { %1387 = vmatpush3.bf16.msra.mxu0 %v785_v22 }
 0x7d1   :  { %v1465_v23 = vpop.eup %1464  ;;  %1398 = vmatprep.subr.bf16.mxu0 %v1581_v0 }
 0x7d2   :  { %v723_v25 = vmul.f32 %v1465_v23, %v1461_v14  ;;  %v839_v35 = vpop.permute.xlu0 %838 }
 0x7d4   :  { %v727_v27 = vadd.f32 %v726_v24, %v723_v25 }
 0x7d5   :  { %v1467_v28 = vpop.eup %1466 }
 0x7d6   :  { %v724_v29 = vmul.f32 %v1467_v28, %v1463_v18  ;;  %v729_v30 = vpack.c.bf16 %v727_v27, %v727_v27 }
 0x7d8   :  { %1383 = vmatmul.mubr.msk.bf16.vlgmr.msra.gmra.mrb[20].mxu1 %vm146_vm2, %v729_v30  ;;  %v728_v31 = vadd.f32 %v726_v24, %v724_v29 }
 0x7d9   :  { %1393 = vmatpush3.bf16.xpose.msra.mxu1 %v846_v15  ;;  %1394 = vmatprep.mubr.msk.bf16.mxu1 %vm1582_vm0, %v1581_v0 }
 0x7da   :  { %v730_v33 = vpack.c.bf16 %v728_v31, %v728_v31  ;;  %1404 = vmatprep.subr.bf16.mxu1 %v1581_v0 }
 0x7dc   :  { %1389 = vmatmul.mubr.msk.bf16.vlgmr.msra.gmra.mrb[24].mxu0 %vm146_vm2, %v730_v33 }
 0x7dd   :  { %1399 = vmatpush3.bf16.xpose.msra.mxu0 %v896_v34  ;;  %1400 = vmatprep.mubr.msk.bf16.mxu0 %vm1582_vm0, %v1581_v0 }
 0x7de   :  { %1410 = vmatprep.subr.bf16.mxu0 %v1581_v0 }
 0x7e0   :  { %1395 = vmatmul.mubr.msk.bf16.vlgmr.msra.gmra.mrb[24].mxu1 %vm146_vm2, %v839_v35 }
 0x7e1   :  { %1406 = vmatprep.mubr.msk.bf16.mxu1 %vm1582_vm0, %v1581_v0 }
 0x7e4   :  { %1401 = vmatmul.mubr.msk.bf16.vlgmr.msra.gmra.mrb[28].mxu0 %vm146_vm2, %v889_v36 }
 0x7e5   :  { %1412 = vmatprep.mubr.msk.bf16.mxu0 %vm1582_vm0, %v1581_v0 }
 0x8ab   :  { %v773_v37 = vpop.f32.mrb[20].mxu1 }
 0x8ac   :  { %v1384_v38 = vpop.f32.mrb[21].mxu1 }
 0x8ad   :  { %v776_v39 = vpop.f32.mrb[22].mxu1 }
 0x8ae   :  { %v1385_v40 = vpop.f32.mrb[23].mxu1 }
 0x8af   :  { %v821_v41 = vpop.f32.mrb[24].mxu0 }
 0x8b0   :  { %v1390_v42 = vpop.f32.mrb[25].mxu0 }
 0x8b1   :  { %v824_v43 = vpop.f32.mrb[26].mxu0 }
 0x8b2   :  { %v1391_v44 = vpop.f32.mrb[27].mxu0 }
 0x8b3   :  { %v882_v45 = vpop.f32.mrb[24].mxu1 }
 0x8b4   :  { %v1396_v46 = vpop.f32.mrb[25].mxu1  ;;  %v938_v47 = vsel %vm146_vm2, %v882_v45, -inf }
 0x8b5   :  { %939 = vmax.xlane.f32.xlu0 %v938_v47  ;;  %v885_v48 = vpop.f32.mrb[26].mxu1 }
 0x8b6   :  { %v1397_v50 = vpop.f32.mrb[27].mxu1 }
 0x8b7   :  { %v932_v51 = vpop.f32.mrb[28].mxu0 }
 0x8b8   :  { %v1402_v52 = vpop.f32.mrb[29].mxu0  ;;  %v941_v54 = vsel %vm146_vm2, %v932_v51, -inf }
 0x8b9   :  { %942 = vmax.xlane.f32.xlu1 %v941_v54  ;;  %v935_v55 = vpop.f32.mrb[30].mxu0  ;;  %v1595_v52 = vmov 1983009808  }
 0x8ba   :  { %v1403_v56 = vpop.f32.mrb[31].mxu0  ;;  %v1122_v54 = vunpack.c.l.s4 %v1595_v52  ;;  %v1124_v55 = vlaneseq }
 0x8ca   :  { %966 = vrot.lane.b32.xlu1 %v1688_v5, %s1592_s15 }
 0x8ce   :  { %594 = vrot.lane.b32.xlu1 %v1776_v49, %s1580_s21 }
 0x8d2   :  { %596 = vrot.lane.b32.xlu1 %v1778_v53, %s1580_s21 }
 0x8d6   :  { %831 = vrot.lane.b32.xlu1 %v821_v41, %s1593_s16 }
 0x942   :  { %v940_v57 = vpop.xlane.xlu0 %939 }
 0x943   :  { %v944_v58 = vsub.f32 %v882_v45, %v940_v57  ;;  %v1270_v57 = vld [vmem:[%s1865_s3] ss:$0 sm:$0xff]  ;;  %s1597_s3 = smov 32  }
 0x945   :  { %v946_v59 = vmul.f32 1.442695, %v944_v58 }
 0x946   :  { %v943_v60 = vpop.xlane.xlu1 %942 }
 0x947   :  { %1468 = vpow2.f32 %v946_v59  ;;  %v945_v61 = vsub.f32 %v932_v51, %v943_v60  ;;  %v1271_v59 = vld [vmem:[%s1866_s4] ss:$0 sm:$0xff]  ;;  %s1598_s4 = smov [#allocation9]  }
 0x948   :  { %s1236_s22 = sshll.u32 %s1598_s4, 4  ;;  %s1237_s22 = int_to_ptr.vmem [resolvable:$true] %s1236_s22 }
 0x949   :  { %v948_v62 = vmul.f32 1.442695, %v945_v61  ;;  %v1123_v61 = vunpack.c.0.s8 %v1122_v54  ;;  %p1551_p11 = scmp.lt.s32.totalorder %s1237_s22, %s1237_s22 }
 0x94a   :  { %v967_v63 = vpop.permute.xlu1 %966 }
 0x94b   :  { %1470 = vpow2.f32 %v948_v62  ;;  %v972_v1 = vsel %vm274_vm3, %v967_v63, 0  ;;  %v1125_v62 = vshrl.u32 %v1124_v55, 7  ;;  %v1596_v63 = vmov 1934713408  }
 0x94c   :  { %1405 = vmatpush3.bf16.msra.mxu1 %v972_v1  ;;  %v1153_v1 = vunpack.c.l.s4 %v1596_v63 }
 0x94e   :  { %v595_v5 = vpop.permute.xlu1 %594 }
 0x94f   :  { %601 = vst.msk [vmem:[#allocation2] sm:$0xff] %vm600_vm4, %v595_v5 }
 0x951   :  { %v1469_v49 = vpop.eup %1468 }
 0x952   :  { %v597_v2 = vpop.permute.xlu1 %596  ;;  %v950_v53 = vsel %vm146_vm2, %v1469_v49, 0.0 }
 0x953   :  { %602 = vst.msk [vmem:[#allocation2 + $0x8] sm:$0xff] %vm600_vm4, %v597_v2  ;;  %951 = vadd.xlane.f32.xlu0 %v950_v53 }
 0x955   :  { %v1471_v3 = vpop.eup %1470 }
 0x956   :  { %v832_v4 = vpop.permute.xlu1 %831  ;;  %v953_v6 = vsel %vm146_vm2, %v1471_v3, 0.0 }
 0x957   :  { %837 = vst.msk [vmem:[#allocation2 + $0x8] sm:$0xff] %vm835_vm5, %v832_v4  ;;  %954 = vadd.xlane.f32.xlu0 %v953_v6  ;;  %v1154_v4 = vunpack.c.0.s8 %v1153_v1 }
 0x96d   :  { %1014 = vrot.lane.b32.xlu0 %v1692_v9, %s1592_s15 }
 0x971   :  { %829 = vrot.lane.b32.xlu0 %v773_v37, %s1593_s16 }
 0x9e0   :  { %v952_v7 = vpop.xlane.xlu0 %951 }
 0x9e1   :  { %1472 = vrcp.f32 %v952_v7 }
 0x9e4   :  { %v955_v8 = vpop.xlane.xlu0 %954 }
 0x9e5   :  { %1474 = vrcp.f32 %v955_v8 }
 0x9e8   :  { %v1015_v10 = vpop.permute.xlu0 %1014 }
 0x9e9   :  { %v1020_v11 = vsel %vm274_vm3, %v1015_v10, 0 }
 0x9ea   :  { %1411 = vmatpush3.bf16.msra.mxu0 %v1020_v11  ;;  %v1157_v11 = vsub.s32 %v1154_v4, %v1125_v62 }
 0x9eb   :  { %v1473_v12 = vpop.eup %1472 }
 0x9ec   :  { %v958_v14 = vmul.f32 %v1473_v12, %v1469_v49  ;;  %v830_v16 = vpop.permute.xlu0 %829 }
 0x9ed   :  { %836 = vst.msk [vmem:[#allocation2] sm:$0xff] %vm835_vm5, %v830_v16 }
 0x9ee   :  { %v962_v18 = vadd.f32 %v961_v13, %v958_v14 }
 0x9ef   :  { %v1475_v17 = vpop.eup %1474 }
 0x9f0   :  { %v959_v19 = vmul.f32 %v1475_v17, %v1471_v3  ;;  %v964_v20 = vpack.c.bf16 %v962_v18, %v962_v18  ;;  %v1126_v3 = vsub.s32 %v1123_v61, %v1125_v62 }
 0x9f2   :  { %1407 = vmatmul.mubr.msk.bf16.vlgmr.msra.gmra.mrb[28].mxu1 %vm146_vm2, %v964_v20  ;;  %v963_v9 = vadd.f32 %v961_v13, %v959_v19 }
 0x9f4   :  { %v965_v21 = vpack.c.bf16 %v963_v9, %v963_v9 }
 0x9f6   :  { %1413 = vmatmul.mubr.msk.bf16.vlgmr.msra.gmra.mrb[32].mxu0 %vm146_vm2, %v965_v21 }
 0xac5   :  { %v1008_v22 = vpop.f32.mrb[28].mxu1 }
 0xac6   :  { %1064 = vrot.lane.b32.xlu0 %v1008_v22, %s1594_s1  ;;  %v1408_v23 = vpop.f32.mrb[29].mxu1 }
 0xac7   :  { %v1011_v24 = vpop.f32.mrb[30].mxu1 }
 0xac8   :  { %v1409_v25 = vpop.f32.mrb[31].mxu1 }
 0xac9   :  { %v1056_v26 = vpop.f32.mrb[32].mxu0 }
 0xaca   :  { %1066 = vrot.lane.b32.xlu1 %v1056_v26, %s1594_s1  ;;  %v1414_v27 = vpop.f32.mrb[33].mxu0 }
 0xacb   :  { %v1059_v28 = vpop.f32.mrb[34].mxu0 }
 0xacc   :  { %v1415_v29 = vpop.f32.mrb[35].mxu0 }
 0xb38   :  { %v1065_v30 = vpop.permute.xlu0 %1064 }
 0xb39   :  { %1071 = vst.msk [vmem:[#allocation2] sm:$0xff] %vm1070_vm6, %v1065_v30 }
 0xb3c   :  { %v1067_v15 = vpop.permute.xlu1 %1066 }
 0xb3d   :  { %1072 = vst.msk [vmem:[#allocation2 + $0x8] sm:$0xff] %vm1070_vm6, %v1067_v15 }
 0xb40   :  { %v1073_v31 = vld [vmem:[#allocation2] sm:$0xff] }
 0xb41   :  { %v1075_v32 = vsel %vm86_vm1, %v1073_v31, 0.0 }
 0xb42   :  { %1076 = vadd.xlane.f32.xlu0 %v1075_v32 }
 0xb44   :  { %v1074_v33 = vld [vmem:[#allocation2 + $0x8] sm:$0xff] }
 0xb45   :  { %v1078_v34 = vsel %vm86_vm1, %v1074_v33, 0.0 }
 0xb46   :  { %1079 = vadd.xlane.f32.xlu1 %v1078_v34 }
 0xbcf   :  { %v1077_v35 = vpop.xlane.xlu0 %1076 }
 0xbd0   :  { %v1082_v36 = vmul.f32 0.03125, %v1077_v35 }
 0xbd2   :  { %v1084_v37 = vsub.f32 %v1073_v31, %v1082_v36 }
 0xbd3   :  { %v1080_v38 = vpop.xlane.xlu1 %1079 }
 0xbd4   :  { %v1083_v39 = vmul.f32 0.03125, %v1080_v38  ;;  %v1086_v40 = vmul.f32 %v1084_v37, %v1084_v37 }
 0xbd6   :  { %v1085_v41 = vsub.f32 %v1074_v33, %v1083_v39  ;;  %v1088_v42 = vsel %vm86_vm1, %v1086_v40, 0.0 }
 0xbd7   :  { %1089 = vadd.xlane.f32.xlu0 %v1088_v42 }
 0xbd8   :  { %v1087_v43 = vmul.f32 %v1085_v41, %v1085_v41 }
 0xbda   :  { %v1091_v44 = vsel %vm86_vm1, %v1087_v43, 0.0 }
 0xbdb   :  { %1092 = vadd.xlane.f32.xlu0 %v1091_v44 }
 0xc64   :  { %v1090_v45 = vpop.xlane.xlu0 %1089 }
 0xc65   :  { %v1094_v46 = vmul.f32 0.03125, %v1090_v45 }
 0xc67   :  { %v1096_v47 = vadd.f32 1e-05, %v1094_v46 }
 0xc68   :  { %v1093_v48 = vpop.xlane.xlu0 %1092 }
 0xc69   :  { %1476 = vrsqrt.f32 %v1096_v47  ;;  %v1095_v50 = vmul.f32 0.03125, %v1093_v48 }
 0xc6b   :  { %v1097_v51 = vadd.f32 1e-05, %v1095_v50 }
 0xc6d   :  { %1478 = vrsqrt.f32 %v1097_v51 }
 0xc73   :  { %v1477_v56 = vpop.eup %1476 }
 0xc74   :  { %v1100_v58 = vmul.f32 %v1477_v56, %v1084_v37 }
 0xc76   :  { %v1109_v60 = vmul.f32 %v1270_v57, %v1100_v58 }
 0xc77   :  { %v1479_v5 = vpop.eup %1478 }
 0xc78   :  { %v1101_v49 = vmul.f32 %v1479_v5, %v1085_v41  ;;  %v1118_v2 = vadd.f32 %v1271_v59, %v1109_v60 }
 0xc7a   :  { %v1110_v53 = vmul.f32 %v1270_v57, %v1101_v49  ;;  %v1120_v7 = vcombine.high %v1118_v2, %v1581_v0  ;;  %v1127_v8 = vrot.slane %v1118_v2, %v1126_v3 }
 0xc7c   :  { %v1119_v6 = vadd.f32 %v1271_v59, %v1110_v53  ;;  %v1134_v16 = vrot.slane %v1120_v7, %v1126_v3 }
 0xc7e   :  { %v1142_v10 = vrot.slane %v1119_v6, %v1126_v3  ;;  %v1135_v12 = vcombine.high %v1119_v6, %v1581_v0 }
 0xc80   :  { %v1151_v13 = vcombine.high %v1127_v8, %v1142_v10  ;;  %v1150_v14 = vcombine.low %v1127_v8, %v1142_v10  ;;  %v1149_v18 = vrot.slane %v1135_v12, %v1126_v3 }
 0xc82   :  { %v1165_v17 = vrot.slane %v1151_v13, %v1157_v11  ;;  %v1158_v19 = vrot.slane %v1150_v14, %v1157_v11  ;;  %v1166_v20 = vcombine.low %v1134_v16, %v1149_v18  ;;  %v1167_v23 = vcombine.high %v1134_v16, %v1149_v18 }
 0xc84   :  { %1191 = vrot.lane.b32.xlu1 %v1165_v17, %s1576_s30  ;;  %v1174_v9 = vrot.slane %v1166_v20, %v1157_v11  ;;  %v1182_v21 = vcombine.high %v1158_v19, %v1581_v0  ;;  %v1183_v24 = vcombine.high %v1165_v17, %v1581_v0  ;;  %v1181_v25 = vrot.slane %v1167_v23, %v1157_v11 }
 0xc86   :  { %v1184_v22 = vcombine.high %v1174_v9, %v1581_v0  ;;  %v1185_v26 = vcombine.high %v1181_v25, %v1581_v0 }
 0xc88   :  { %1187 = vrot.lane.b32.xlu1 %v1182_v21, %s1597_s3  ;;  %1199 = vrot.lane.b32.xlu0 %v1184_v22, %s1597_s3 }
 0xc8c   :  { %1203 = vrot.lane.b32.xlu1 %v1181_v25, %s1576_s30  ;;  %1195 = vrot.lane.b32.xlu0 %v1183_v24, %s1583_s2  ;;  %s1546_s30 = scalar_lea.vmem %s1237_s22, 64 }
 0xc8d   :  { %p1547_p10 = scmp.ne.s32.totalorder %s1237_s22, %s1546_s30  ;;  %p1552_p12 = scmp.lt.s32.totalorder %s1546_s30, %s1546_s30 }
 0xc8f   :  { %p1553_p13 = por %p1552_p12, %p1551_p11 }
 0xc90   :  { %1207 = vrot.lane.b32.xlu1 %v1185_v26, %s1583_s2 }
 0xc91   :  { %p1554_p0 = pnand %p1553_p13, %p1547_p10 }
 0xcf6   :  { %v1192_v27 = vpop.permute.xlu1 %1191 }
 0xcfa   :  { %v1188_v28 = vpop.permute.xlu1 %1187  ;;  %v1200_v29 = vpop.permute.xlu0 %1199 }
 0xcfb   :  { %v1210_v15 = vsel %vm86_vm1, %v1158_v19, %v1188_v28  ;;  %v1215_v32 = vsel %vm86_vm1, %v1174_v9, %v1200_v29 }
 0xcfc   :  { %v1212_v34 = vsel %vm1211_vm7, %v1210_v15, %v1192_v27 }
 0xcfe   :  { %v1204_v30 = vpop.permute.xlu1 %1203  ;;  %v1196_v31 = vpop.permute.xlu0 %1195 }
 0xcff   :  { %v1216_v33 = vsel %vm1211_vm7, %v1215_v32, %v1204_v30  ;;  %v1214_v36 = vsel %vm1213_vm8, %v1212_v34, %v1196_v31 }
 0xd02   :  { %v1208_v35 = vpop.permute.xlu1 %1207 }
 0xd03   :  { %v1217_v0 = vsel %vm1213_vm8, %v1216_v33, %v1208_v35 }
 0xd04   :  { %v1220_v37 = vcombine.low %v1214_v36, %v1217_v0 }
 0xd06   :  { %1272 = vst.sshfl [vmem:[#allocation9] sm:$0x33 pattern:$0x76325410] %v1220_v37 }
 0xd07   :  { %1557 = shalt.err (!%p1554_p0)
}
 0xd08   :  { %s1558_s25 = scalar_lea.hbm %s1867_s5, 64 }
 0xd09   :  { %p1559_p1 = scmp.ne.s32.totalorder %s1867_s5, %s1558_s25  ;;  %p1562_p2 = scmp.lt.u32.totalorder %s1558_s25, %s1867_s5 }
 0xd0b   :  { %p1564_p3 = pnand %p1562_p2, %p1559_p1 }
 0xd0d   :  { %1567 = shalt.err (!%p1564_p3)
}
 0xd0e   :  { %1239 = dma.vmem_to_hbm [thread:$0]  %s1237_s22, 64, %s1867_s5, [#allocation5]  }
 0xd0f   :  { %1572 = dma.done.wait [#allocation5], 64  }
 0xd10   :  { %1573 = vsyncadd [#allocation5], 4294967232 }
 0xd11   :  { %1243 = vsyncpa [#allocation4], 1 }
 0xd12   :  { %1244 = vsyncpa [#allocation7], 1 }
 0xd13   :  { %1245 = vsyncpa [#allocation5], 1 }

</bundles_post_ra>
